<compile_context>
chip_gen: v7x
topology: tpu7x:2x2x1
jax: 0.10.0
libtpu: 0.0.40
codegen_flags: <defaults>
</compile_context>

<pallas_src>
import functools

import jax
import jax.numpy as jnp
from jax.experimental import pallas as pl
from jax.experimental.pallas import tpu as pltpu

_BN_EPS = 1e-5


def _round_up(x, m):
    return (x + m - 1) // m * m


@functools.lru_cache(maxsize=None)
def _wide_mxu():
    """True on 256-wide-MXU generations (v6e / v7x); conservative otherwise."""
    try:
        kind = jax.devices()[0].device_kind.lower()
    except Exception:
        return False
    return ("v6" in kind) or ("v7" in kind) or ("7x" in kind)


# ----------------------------------------------------------------------------
# Fused matmul + bias (+ residual) (+ ReLU) epilogue.  BN scale is pre-folded
# into the weight matrix, so only a bias add remains in the epilogue.
# ----------------------------------------------------------------------------
def _mm_kernel_single(relu, has_res):
    """Single K step: no accumulator scratch, compute + epilogue + store."""
    def kernel(a_ref, b_ref, c_ref, *rest):
        if has_res:
            r_ref, o_ref = rest
        else:
            r_ref, (o_ref,) = None, rest
        y = jnp.dot(a_ref[...], b_ref[...],
                    preferred_element_type=jnp.float32) + c_ref[...]
        if has_res:
            y = y + r_ref[...].astype(jnp.float32)
        if relu:
            y = jnp.maximum(y, 0.0)
        o_ref[...] = y.astype(o_ref.dtype)
    return kernel


def _mm_kernel_multik(relu, has_res):
    """Multiple K steps: f32 VMEM accumulator + pl.when init/finalize."""
    def kernel(a_ref, b_ref, c_ref, *rest):
        if has_res:
            r_ref, o_ref, acc_ref = rest
        else:
            r_ref, (o_ref, acc_ref) = None, rest

        @pl.when(pl.program_id(2) == 0)
        def _init():
            acc_ref[...] = jnp.zeros_like(acc_ref)

        acc_ref[...] += jnp.dot(a_ref[...], b_ref[...],
                                preferred_element_type=jnp.float32)

        @pl.when(pl.program_id(2) == pl.num_programs(2) - 1)
        def _epilogue():
            y = acc_ref[...] + c_ref[...]
            if has_res:
                y = y + r_ref[...].astype(jnp.float32)
            if relu:
                y = jnp.maximum(y, 0.0)
            o_ref[...] = y.astype(o_ref.dtype)
    return kernel


def _pick_tiles(M, K, N):
    # tm: feed the full 256-wide MXU on v6e/v7x when M allows; 128 otherwise.
    if _wide_mxu() and M >= 256:
        tm = 256
    else:
        tm = min(128, _round_up(M, 8))
    # tn <= 256 keeps >= 4 j-blocks on the deep layers (2-TC sharding on v7x).
    if N % 256 == 0:
        tn = 256
    elif N % 128 == 0:
        tn = 128
    else:
        tn = N                      # small N (e.g. 64): full-width block, no pad
    # tk: full-K (single K step) when it fits comfortably; else 512/256/128.
    if K <= 2304:
        tk = K
    else:
        tk = next((t for t in (512, 256, 128) if K % t == 0), 128)
    return tm, tn, tk


def matmul_fused(a, b, bias, residual=None, *, relu=True,
                 out_dtype=jnp.bfloat16):
    """(M,K) @ (K,N) with fused y = [relu](acc + bias [+ residual])."""
    M, K = a.shape
    K2, N = b.shape
    assert K == K2 and bias.shape == (1, N)

    tm, tn, tk = _pick_tiles(M, K, N)
    Mp, Kp, Np = _round_up(M, tm), _round_up(K, tk), _round_up(N, tn)

    a = a.astype(jnp.bfloat16)
    b = b.astype(jnp.bfloat16)
    if (Mp, Kp) != (M, K):
        a = jnp.pad(a, ((0, Mp - M), (0, Kp - K)))
    if (Kp, Np) != (K, N):
        b = jnp.pad(b, ((0, Kp - K), (0, Np - N)))
    bias = bias.astype(jnp.float32)
    if Np != N:
        bias = jnp.pad(bias, ((0, 0), (0, Np - N)))

    has_res = residual is not None
    operands = [a, b, bias]
    in_specs = [pl.BlockSpec((tm, tk), lambda i, j, k: (i, k)),
                pl.BlockSpec((tk, tn), lambda i, j, k: (k, j)),
                pl.BlockSpec((1, tn), lambda i, j, k: (0, j))]
    if has_res:
        r = residual.astype(jnp.bfloat16)
        if (Mp, Np) != (M, N):
            r = jnp.pad(r, ((0, Mp - M), (0, Np - N)))
        operands.append(r)
        in_specs.append(pl.BlockSpec((tm, tn), lambda i, j, k: (i, j)))

    nk = Kp // tk
    if nk == 1:
        kernel = _mm_kernel_single(relu, has_res)
        scratch = []
    else:
        kernel = _mm_kernel_multik(relu, has_res)
        scratch = [pltpu.VMEM((tm, tn), jnp.float32)]

    bytes_accessed = 2 * (M * K + K * N + M * N) + 4 * N
    if has_res:
        bytes_accessed += 2 * M * N

    out = pl.pallas_call(
        kernel,
        out_shape=jax.ShapeDtypeStruct((Mp, Np), out_dtype),
        grid_spec=pltpu.PrefetchScalarGridSpec(
            num_scalar_prefetch=0,
            grid=(Mp // tm, Np // tn, nk),
            in_specs=in_specs,
            out_specs=pl.BlockSpec((tm, tn), lambda i, j, k: (i, j)),
            scratch_shapes=scratch),
        compiler_params=pltpu.CompilerParams(
            dimension_semantics=("parallel", "parallel", "arbitrary")),
        cost_estimate=pl.CostEstimate(flops=2 * M * N * K,
                                      transcendentals=0,
                                      bytes_accessed=bytes_accessed),
    )(*operands)

    if (Mp, Np) != (M, N):
        out = out[:M, :N]
    return out


# ----------------------------------------------------------------------------
# Convolution (+ fused bias / residual / ReLU) via im2col + fused matmul.
# Only used for: 7x7 stem, 1x1 convs, and the 3 stride-2 3x3 convs.
# ----------------------------------------------------------------------------
@functools.partial(jax.jit,
                   static_argnames=("ksize", "stride", "padding", "relu"))
def conv_bn(x, wmat, bias, residual=None, *, ksize, stride, padding, relu):
    """x: (B,H,W,Cin) bf16 NHWC; wmat: (K, Cout) bf16 with BN scale folded."""
    B, H, W, Cin = x.shape
    Cout = wmat.shape[1]
    Ho = (H + 2 * padding - ksize) // stride + 1
    Wo = (W + 2 * padding - ksize) // stride + 1

    if ksize == 1 and padding == 0:
        # TODO(synk): for stride 2 the strided slice still makes an HBM copy;
        # could be folded into the matmul a-BlockSpec index_map instead.
        xs = x if stride == 1 else x[:, ::stride, ::stride, :]
        patches = xs.reshape(-1, Cin)
    else:
        # im2col (only the 7x7 stem and the 3 stride-2 3x3 convs hit this).
        xp = jnp.pad(x, ((0, 0), (padding, padding), (padding, padding), (0, 0)))
        cols = [xp[:, dy:dy + stride * Ho:stride, dx:dx + stride * Wo:stride, :]
                for dy in range(ksize) for dx in range(ksize)]
        patches = jnp.concatenate(cols, axis=-1).reshape(-1, ksize * ksize * Cin)
        kw = wmat.shape[0]
        if kw > patches.shape[1]:       # stem weight K zero-padded to 256
            patches = jnp.pad(patches, ((0, 0), (0, kw - patches.shape[1])))

    res2d = None if residual is None else residual.reshape(-1, Cout)
    out = matmul_fused(patches, wmat, bias, res2d, relu=relu)
    return out.reshape(B, Ho, Wo, Cout)


# ----------------------------------------------------------------------------
# Fused bottleneck tail (stride-1 blocks):
#   conv2 (3x3, tap-accumulating, no im2col) + bn2 + relu
#   + conv3 (1x1) + bn3 + residual add + relu      -- one pallas_call.
# ----------------------------------------------------------------------------
def _bottleneck_tail_kernel(x_ref, w2_ref, b2_ref, w3_ref, b3_ref, r_ref, o_ref):
    # x_ref : (1, H+2, W+2, Cmid)  zero-padded conv1 output (one batch element)
    # w2_ref: (9, Cmid, Cmid)      3x3 weights (BN2 scale folded), tap-major
    # w3_ref: (Cmid, Cout)         1x1 conv3 weights (BN3 scale folded)
    # r_ref : (1, H*W, Cout)       residual (identity / downsample output)
    # o_ref : (1, H*W, Cout)
    _, Hp, Wp, Cmid = x_ref.shape
    H, W = Hp - 2, Wp - 2

    acc = None
    for t in range(9):                       # tap-accumulating conv: no im2col
        dy, dx = t // 3, t % 3
        a = x_ref[0, dy:dy + H, dx:dx + W, :].reshape(H * W, Cmid)
        d = jnp.dot(a, w2_ref[t], preferred_element_type=jnp.float32)
        acc = d if acc is None else acc + d

    y2 = jnp.maximum(acc + b2_ref[...], 0.0).astype(x_ref.dtype)
    y3 = (jnp.dot(y2, w3_ref[...], preferred_element_type=jnp.float32)
          + b3_ref[...] + r_ref[0].astype(jnp.float32))
    o_ref[0] = jnp.maximum(y3, 0.0).astype(o_ref.dtype)


@jax.jit
def bottleneck_tail(y1, w2, b2, w3, b3, residual):
    """y1: (B,H,W,Cmid) conv1 output; residual: (B,H,W,Cout)."""
    B, H, W, Cmid = y1.shape
    Cout = w3.shape[1]
    # TODO(synk): conv1 could also be folded in here (needs an in-kernel
    # padded scratch store), dropping one more pallas_call per bottleneck.
    xp = jnp.pad(y1, ((0, 0), (1, 1), (1, 1), (0, 0)))
    res = residual.reshape(B, H * W, Cout).astype(jnp.bfloat16)

    out = pl.pallas_call(
        _bottleneck_tail_kernel,
        out_shape=jax.ShapeDtypeStruct((B, H * W, Cout), jnp.bfloat16),
        grid_spec=pltpu.PrefetchScalarGridSpec(
            num_scalar_prefetch=0,
            grid=(B,),
            in_specs=[
                pl.BlockSpec((1, H + 2, W + 2, Cmid), lambda b: (b, 0, 0, 0)),
                pl.BlockSpec((9, Cmid, Cmid), lambda b: (0, 0, 0)),
                pl.BlockSpec((1, Cmid), lambda b: (0, 0)),
                pl.BlockSpec((Cmid, Cout), lambda b: (0, 0)),
                pl.BlockSpec((1, Cout), lambda b: (0, 0)),
                pl.BlockSpec((1, H * W, Cout), lambda b: (b, 0, 0)),
            ],
            out_specs=pl.BlockSpec((1, H * W, Cout), lambda b: (b, 0, 0))),
        compiler_params=pltpu.CompilerParams(
            dimension_semantics=("parallel",),
            vmem_limit_bytes=32 * 1024 * 1024),
    )(xp, w2, b2, w3, b3, res)
    return out.reshape(B, H, W, Cout)


# ----------------------------------------------------------------------------
# Pooling kernels (gridded per batch element)
# ----------------------------------------------------------------------------
def _maxpool_dense_kernel(x_ref, o_ref):
    # x_ref: (1, H+2, W+2, C) padded with -inf; o_ref: (1, H, W, C) dense
    # (stride-1) 3x3 max map.  Stride-2 subsampling is done by the caller.
    x = x_ref[...]
    Ho, Wo = o_ref.shape[1], o_ref.shape[2]
    m = x[:, 0:Ho, 0:Wo, :]
    for dy in range(3):
        for dx in range(3):
            if dy == 0 and dx == 0:
                continue
            m = jnp.maximum(m, x[:, dy:dy + Ho, dx:dx + Wo, :])
    o_ref[...] = m


@jax.jit
def maxpool_3x3_s2_p1(x):
    """NHWC max-pool, kernel 3, stride 2, padding 1 (as nn.MaxPool2d(3,2,1))."""
    B, H, W, C = x.shape
    xp = jnp.pad(x, ((0, 0), (1, 1), (1, 1), (0, 0)),
                 constant_values=-jnp.inf)
    dense = pl.pallas_call(
        _maxpool_dense_kernel,
        out_shape=jax.ShapeDtypeStruct((B, H, W, C), x.dtype),
        grid=(B,),
        in_specs=[pl.BlockSpec((1, H + 2, W + 2, C), lambda b: (b, 0, 0, 0))],
        out_specs=pl.BlockSpec((1, H, W, C), lambda b: (b, 0, 0, 0)),
        compiler_params=pltpu.CompilerParams(dimension_semantics=("parallel",)),
    )(xp)
    # TODO(synk): emit the stride-2 output directly in-kernel (strided pl.ds
    # reads) instead of the dense map + XLA slice; small one-off HBM saving.
    return dense[:, ::2, ::2, :]


def _avgpool_kernel(x_ref, o_ref):
    o_ref[...] = jnp.mean(x_ref[...].astype(jnp.float32), axis=(1, 2),
                          keepdims=True)


@jax.jit
def global_avgpool(x):
    """NHWC -> (B, C) float32 global average (AdaptiveAvgPool2d((1,1)))."""
    B, H, W, C = x.shape
    out = pl.pallas_call(
        _avgpool_kernel,
        out_shape=jax.ShapeDtypeStruct((B, 1, 1, C), jnp.float32),
        grid=(B,),
        in_specs=[pl.BlockSpec((1, H, W, C), lambda b: (b, 0, 0, 0))],
        out_specs=pl.BlockSpec((1, 1, 1, C), lambda b: (b, 0, 0, 0)),
        compiler_params=pltpu.CompilerParams(dimension_semantics=("parallel",)),
    )(x)
    return out.reshape(B, C)


# ----------------------------------------------------------------------------
# ResNet-152 parameters (Bottleneck x [3, 8, 36, 3]), synthetic deterministic.
# BatchNorm scale is folded into the weight columns; only bias remains.
# ----------------------------------------------------------------------------
def _make_bn_folded(key, c):
    k1, k2, k3, k4 = jax.random.split(key, 4)
    gamma = 1.0 + 0.1 * jax.random.normal(k1, (c,), jnp.float32)
    beta = 0.1 * jax.random.normal(k2, (c,), jnp.float32)
    mean = 0.1 * jax.random.normal(k3, (c,), jnp.float32)
    var = 1.0 + 0.1 * jax.random.uniform(k4, (c,), jnp.float32)
    scale = gamma / jnp.sqrt(var + _BN_EPS)
    bias = (beta - mean * scale).reshape(1, c)
    return scale, bias


def _conv1x1_bn(kw, kbn, cin, cout):
    std = 0.5 * (2.0 / cin) ** 0.5
    w = std * jax.random.normal(kw, (cout, cin), jnp.float32)
    scale, bias = _make_bn_folded(kbn, cout)
    wmat = (w.T * scale[None, :]).astype(jnp.bfloat16)          # (cin, cout)
    return wmat, bias


def _conv3x3_bn(kw, kbn, cin, cout, *, im2col):
    std = 0.5 * (2.0 / (cin * 9)) ** 0.5
    w = std * jax.random.normal(kw, (cout, cin, 3, 3), jnp.float32)
    scale, bias = _make_bn_folded(kbn, cout)
    wt = jnp.transpose(w, (2, 3, 1, 0)) * scale                  # (3,3,cin,cout)
    wt = wt.reshape(9, cin, cout).astype(jnp.bfloat16)
    if im2col:                                                   # stride-2 path
        wt = wt.reshape(9 * cin, cout)
    return wt, bias


def _conv7x7_bn(kw, kbn, cin, cout, kpad=256):
    std = 0.5 * (2.0 / (cin * 49)) ** 0.5
    w = std * jax.random.normal(kw, (cout, cin, 7, 7), jnp.float32)
    scale, bias = _make_bn_folded(kbn, cout)
    wt = (jnp.transpose(w, (2, 3, 1, 0)) * scale).reshape(49 * cin, cout)
    # Zero-pad K (147) up to 256: the stem matmul becomes fully aligned; the
    # patch matrix is padded to match inside conv_bn.
    wt = jnp.pad(wt, ((0, kpad - 49 * cin), (0, 0))).astype(jnp.bfloat16)
    return wt, bias


def build_resnet152_params(key):
    counter = [0]

    def nk():
        counter[0] += 1
        return jax.random.fold_in(key, counter[0])

    params = {}
    params["conv1_w"], params["bn1_b"] = _conv7x7_bn(nk(), nk(), 3, 64)

    layer_cfg = [(64, 3, 1), (128, 8, 2), (256, 36, 2), (512, 3, 2)]
    inplanes = 64
    layers = []
    for planes, nblocks, stride in layer_cfg:
        blocks = []
        for bi in range(nblocks):
            s = stride if bi == 0 else 1
            bp = {"stride": s}
            bp["conv1_w"], bp["bn1_b"] = _conv1x1_bn(nk(), nk(), inplanes, planes)
            bp["conv2_w"], bp["bn2_b"] = _conv3x3_bn(nk(), nk(), planes, planes,
                                                     im2col=(s != 1))
            bp["conv3_w"], bp["bn3_b"] = _conv1x1_bn(nk(), nk(), planes,
                                                     planes * 4)
            if bi == 0 and (s != 1 or inplanes != planes * 4):
                bp["down_w"], bp["down_b"] = _conv1x1_bn(nk(), nk(), inplanes,
                                                         planes * 4)
            blocks.append(bp)
            inplanes = planes * 4
        layers.append(blocks)
    params["layers"] = layers
    return params


# ----------------------------------------------------------------------------
# Forward pass
# ----------------------------------------------------------------------------
def _bottleneck(x, bp):
    s = bp["stride"]
    y1 = conv_bn(x, bp["conv1_w"], bp["bn1_b"],
                 ksize=1, stride=1, padding=0, relu=True)
    if "down_w" in bp:
        identity = conv_bn(x, bp["down_w"], bp["down_b"],
                           ksize=1, stride=s, padding=0, relu=False)
    else:
        identity = x
    if s == 1:
        # conv2 + bn2 + relu + conv3 + bn3 + residual + relu in ONE pallas_call
        return bottleneck_tail(y1, bp["conv2_w"], bp["bn2_b"],
                               bp["conv3_w"], bp["bn3_b"], identity)
    # stride-2 first blocks (layer2/3/4): im2col 3x3 conv, then fused conv3.
    y2 = conv_bn(y1, bp["conv2_w"], bp["bn2_b"],
                 ksize=3, stride=s, padding=1, relu=True)
    return conv_bn(y2, bp["conv3_w"], bp["bn3_b"], identity,
                   ksize=1, stride=1, padding=0, relu=True)


def resnet152_forward(params, x_nchw):
    """Matches net.forward: conv1/bn1/relu/maxpool/layer1-4/avgpool.

    Input  (B, 3, H, W)   NCHW float32
    Output (B, 2048, 1, 1) NCHW float32 (avgpool output, like PyTorch).
    """
    x = jnp.transpose(x_nchw, (0, 2, 3, 1)).astype(jnp.bfloat16)   # NHWC bf16
    x = conv_bn(x, params["conv1_w"], params["bn1_b"],
                ksize=7, stride=2, padding=3, relu=True)
    x = maxpool_3x3_s2_p1(x)
    for blocks in params["layers"]:
        for bp in blocks:
            x = _bottleneck(x, bp)
    pooled = global_avgpool(x)                                     # (B,2048) f32
    B, C = pooled.shape
    return pooled.reshape(B, C, 1, 1)                              # (B,2048,1,1)


# ----------------------------------------------------------------------------
if __name__ == "__main__":
    root = jax.random.PRNGKey(0)
    params = build_resnet152_params(jax.random.fold_in(root, 1))
    x = jax.random.normal(jax.random.fold_in(root, 2), (2, 3, 64, 64),
                          jnp.float32)

    out = resnet152_forward(params, x)
    out = jax.block_until_ready(out)

    assert out.shape == (2, 2048, 1, 1), out.shape
    assert bool(jnp.all(jnp.isfinite(out)))
    print("KERNEL_OK")
</pallas_src>

<mosaic_0001>
module attributes {stable_mosaic.version = 11 : i64} {
  func.func @kernel(%arg0: i32, %arg1: i32, %arg2: i32, %arg3: memref<128x256xbf16, #tpu.memory_space<vmem>>, %arg4: memref<256x64xbf16, #tpu.memory_space<vmem>>, %arg5: memref<1x64xf32, #tpu.memory_space<vmem>>, %arg6: memref<128x64xbf16, #tpu.memory_space<vmem>>) attributes {dimension_semantics = [#tpu.dimension_semantics<parallel>, #tpu.dimension_semantics<parallel>, #tpu.dimension_semantics<arbitrary>], iteration_bounds = array<i64: 16, 1, 1>, scalar_prefetch = 0 : i64, scratch_operands = 0 : i64, tpu.core_type = #tpu.core_type<tc>, window_params = [{transform_indices = @transform_0, window_bounds = array<i64: 128, 256>}, {transform_indices = @transform_1, window_bounds = array<i64: 256, 64>}, {transform_indices = @transform_2, window_bounds = array<i64: 1, 64>}, {transform_indices = @transform_3, window_bounds = array<i64: 128, 64>}]} {
    %c0 = arith.constant 0 : index
    %c0_0 = arith.constant 0 : index
    %0 = vector.load %arg3[%c0, %c0_0] : memref<128x256xbf16, #tpu.memory_space<vmem>>, vector<128x256xbf16>
    %c0_1 = arith.constant 0 : index
    %c0_2 = arith.constant 0 : index
    %1 = vector.load %arg4[%c0_1, %c0_2] : memref<256x64xbf16, #tpu.memory_space<vmem>>, vector<256x64xbf16>
    %cst = arith.constant dense<0.000000e+00> : vector<128x64xf32>
    %2 = tpu.matmul %0, %1, %cst {dimension_numbers = #tpu.dot_dimension_numbers<[1], [0], [0], [1], [0, 0, 1, 1], [], []>} : vector<128x256xbf16>, vector<256x64xbf16>, vector<128x64xf32> -> vector<128x64xf32>
    %c0_3 = arith.constant 0 : index
    %c0_4 = arith.constant 0 : index
    %3 = vector.load %arg5[%c0_3, %c0_4] : memref<1x64xf32, #tpu.memory_space<vmem>>, vector<1x64xf32>
    %4 = vector.broadcast %3 : vector<1x64xf32> to vector<128x64xf32>
    %5 = arith.addf %2, %4 : vector<128x64xf32>
    %cst_5 = arith.constant 0.000000e+00 : f32
    %6 = vector.broadcast %cst_5 : f32 to vector<128x64xf32>
    %7 = arith.maximumf %5, %6 : vector<128x64xf32>
    %8 = arith.truncf %7 : vector<128x64xf32> to vector<128x64xbf16>
    %c0_6 = arith.constant 0 : index
    %c0_7 = arith.constant 0 : index
    %9 = vector.load %arg6[%c0_6, %c0_7] : memref<128x64xbf16, #tpu.memory_space<vmem>>, vector<128x64xbf16>
    tpu.vector_store %arg6[%c0_6, %c0_7], %8 {strides = array<i32>} : memref<128x64xbf16, #tpu.memory_space<vmem>>, vector<128x64xbf16>,
    return
  }
  func.func @transform_0(%arg0: i32, %arg1: i32, %arg2: i32) -> (i32, i32) {
    %c0_i32 = arith.constant 0 : i32
    return %arg0, %arg2 : i32, i32
  }
  func.func @transform_1(%arg0: i32, %arg1: i32, %arg2: i32) -> (i32, i32) {
    %c0_i32 = arith.constant 0 : i32
    return %arg2, %arg1 : i32, i32
  }
  func.func @transform_2(%arg0: i32, %arg1: i32, %arg2: i32) -> (i32, i32) {
    %c0_i32 = arith.constant 0 : i32
    %c0_i32_0 = arith.constant 0 : i32
    return %c0_i32, %arg1 : i32, i32
  }
  func.func @transform_3(%arg0: i32, %arg1: i32, %arg2: i32) -> (i32, i32) {
    %c0_i32 = arith.constant 0 : i32
    return %arg0, %arg1 : i32, i32
  }
}

</mosaic_0001>

<bundles_post_ra>
// kernel: conv_bn.1
= control target key start
LH: loop header
LB: loop body
LE: loop exit
PB: predicated region body
PF: predicated region fallthrough
CT: control target
= control target key end

     0   :  { %8 = vsyncpa [#allocation3], 0  ;;  %s1414_s0 = inlined_call_operand.vmem [shape: bf16[2048,256], index: 0, kind: input, shape index: {}]   ;;  %s1415_s1 = inlined_call_operand.vmem [shape: bf16[256,64], index: 1, kind: input, shape index: {}]   ;;  %s1416_s2 = inlined_call_operand.vmem [shape: f32[1,64], index: 2, kind: input, shape index: {}]   ;;  %s1417_s3 = inlined_call_operand.hbm [shape: bf16[2048,64], index: 3, kind: output, shape index: {}]  }
   0x1   :  { %10 = vsyncpa [#allocation3 + $0x1], 0  ;;  %s1174_s12 = smov 0   ;;  %s1176_s13 = smov 0  }
   0x2   :  { %s1178_s14 = smov 0   ;;  %s1180_s15 = smov 0  }
   0x3   :  { %s1182_s16 = smov 0   ;;  %s1184_s17 = smov 0  }
   0x4 LB: > { %s811_s18 = sadd.s32 4294967295, %s1149_s17   ;;  %s812_s19 = sadd.s32 4294967294, %s1149_s17   ;;  %s1149_s17 = sphi %s1184_s17, %s16_s17   ;;  %s1145_s16 = sphi %s1182_s16, %s1424_s16   ;;  %s1141_s15 = sphi %s1180_s15, %s1423_s15   ;;  %s1137_s14 = sphi %s1178_s14, %s1422_s14   ;;  %s1133_s13 = sphi %s1176_s13, %s1421_s13   ;;  %s1129_s12 = sphi %s1174_s12, %s1420_s12  }
   0x5   : > { %s35_s20 = sadd.s32 1, %s1145_s16  ;;  %s126_s21 = sadd.s32 1, %s1137_s14 }
   0x6   : > { %p37_p0 = scmp.ge.s32.totalorder %s35_s20, 16  ;;  %p136_p1 = scmp.ne.s32.totalorder %s1137_s14, %s1133_s13 }
   0x7   : > { %p137_p2 = scmp.eq.s32.totalorder %s811_s18, 15  ;;  %p142_p3 = scmp.ne.s32.totalorder %s1133_s13, %s1129_s12 }
   0x8   : > { %s1426_s20 = smov (%p37_p0, %s35_s20), 0  ;;  %p143_p5 = scmp.eq.s32.totalorder %s812_s19, 15 }
   0x9   : > { %p1214_p4 = por %p137_p2, %p136_p1  ;;  %s121_s23 = ssub.s32 %s1145_s16, %s1426_s20 }
   0xa   : > { %p817_p6 = scmp.ge.s32.totalorder %s1149_s17, 1  ;;  %p124_p7 = scmp.eq.s32.totalorder %s121_s23, 0 }
   0xb   : > { %p1221_p8 = por %p143_p5, %p142_p3  ;;  %p194_p9 = scmp.lt.s32.totalorder %s1149_s17, 17 }
   0xc   : > { %s1227_s25 = scalar_select %p124_p7, %s1137_s14, %s126_s21  }
   0xd   : > { %p195_p10 = pnand %p817_p6, %p194_p9 }
   0xe   : > { %v1031_v0 = vld [vmem:[%s1415_s1 + $0x40] sm:$0xff] (!%p195_p10)   ;;  %s819_s28 = sshll.u32 (!%p195_p10), %s1141_s15, 4  ;;  %v1033_v2 = vld [vmem:[%s1415_s1 + $0x48] sm:$0xff] (!%p195_p10)   ;;  %v1035_v4 = vld [vmem:[%s1415_s1 + $0x50] sm:$0xff] (!%p195_p10)   ;;  %s231_s30 = sand.u32 (!%p195_p10), 1, %s1133_s13   ;;  %vm668_vm0 = vcmask (!%p195_p10), 519168  }
   0xf   : > { %198 = sbr.rel (%p195_p10) target bundleno = 309 (0x135), region = 32  ;;  %v1032_v1 = vld [vmem:[%s1415_s1] sm:$0xff] (!%p195_p10)   ;;  %894 = vmatprep.subr.bf16.mxu0 (!%p195_p10), %v1031_v0  ;;  %958 = vmatprep.subr.bf16.mxu1 (!%p195_p10), %v1031_v0  ;;  %v1034_v3 = vld [vmem:[%s1415_s1 + $0x8] sm:$0xff] (!%p195_p10)   ;;  %p236_p11 = scmp.lt.s32.totalorder (!%p195_p10), %s819_s28, 255  ;;  %v1036_v5 = vld [vmem:[%s1415_s1 + $0x10] sm:$0xff] (!%p195_p10)  }
  0x10   : > { %895 = vmatpush3.bf16.msra.mxu0 (!%p195_p10), %v1032_v1  ;;  %966 = vmatpush3.bf16.msra.mxu1 (!%p195_p10), %v1032_v1  ;;  %v1037_v6 = vld [vmem:[%s1415_s1 + $0x58] sm:$0xff] (!%p195_p10)   ;;  %v1039_v8 = vld [vmem:[%s1415_s1 + $0x60] sm:$0xff] (!%p195_p10)   ;;  %v1041_v10 = vld [vmem:[%s1415_s1 + $0x68] sm:$0xff] (!%p195_p10)   ;;  %s1151_s19 = smov (!%p195_p10), [#allocation2]  }
  0x11   : > { %896 = vmatprep.subr.bf16.mxu0 (!%p195_p10), %v1033_v2  ;;  %959 = vmatprep.subr.bf16.mxu1 (!%p195_p10), %v1033_v2  ;;  %v1038_v7 = vld [vmem:[%s1415_s1 + $0x18] sm:$0xff] (!%p195_p10)   ;;  %v1040_v9 = vld [vmem:[%s1415_s1 + $0x20] sm:$0xff] (!%p195_p10)   ;;  %v1042_v13 = vld [vmem:[%s1415_s1 + $0x28] sm:$0xff] (!%p195_p10)   ;;  %s1075_s21 = sshll.u32 (!%p195_p10), %s1151_s19, 4  ;;  %s1076_s21 = int_to_ptr.vmem [resolvable:$false] %s1075_s21 }
  0x12   : > { %v1043_v14 = vld [vmem:[%s1415_s1 + $0x70] sm:$0xff] (!%p195_p10)   ;;  %v1045_v16 = vld [vmem:[%s1415_s1 + $0x78] sm:$0xff] (!%p195_p10)   ;;  %v1303_v34 = vld [vmem:[%s1416_s2] ss:$0 sm:$0xff] (!%p195_p10)  ;;  %s1077_s23 = scalar_lea.vmem (!%p195_p10), %s1076_s21, 2048 }
  0x13   : > { %v1044_v15 = vld [vmem:[%s1415_s1 + $0x30] sm:$0xff] (!%p195_p10)   ;;  %v1046_v17 = vld [vmem:[%s1415_s1 + $0x38] sm:$0xff] (!%p195_p10)  }
  0x14   : > { %897 = vmatpush3.bf16.msra.mxu0 (!%p195_p10), %v1034_v3  ;;  %967 = vmatpush3.bf16.msra.mxu1 (!%p195_p10), %v1034_v3 }
  0x15   : > { %898 = vmatprep.subr.bf16.mxu0 (!%p195_p10), %v1035_v4  ;;  %960 = vmatprep.subr.bf16.mxu1 (!%p195_p10), %v1035_v4 }
  0x16   : > { %s1428_s28 = smov (!%p236_p11, %s819_s28), 255 }
  0x17   : > { %s876_s26 = sshll.u32 %s1428_s28, 3  ;;  %s893_s28 = sshll.u32 %s1141_s15, 10 }
  0x18   : > { %899 = vmatpush3.bf16.msra.mxu0 %v1036_v5  ;;  %968 = vmatpush3.bf16.msra.mxu1 %v1036_v5  ;;  %s1260_s5 = scalar_lea.vmem %s1414_s0, %s876_s26  ;;  %s1354_s11 = scalar_lea.hbm %s1417_s3, %s893_s28 }
  0x19   : > { %900 = vmatprep.subr.bf16.mxu0 %v1037_v6  ;;  %961 = vmatprep.subr.bf16.mxu1 %v1037_v6  ;;  %v1049_v11 = vld [vmem:[%s1260_s5 + $0x4] ss:$8 sps:$4 sm:$0xff]   ;;  %v1047_v18 = vld [vmem:[%s1260_s5] ss:$8 sps:$4 sm:$0xff]   ;;  %v1053_v20 = vld [vmem:[%s1260_s5 + $0x14] ss:$8 sps:$4 sm:$0xff]  }
  0x1a   : > { %v1052_v12 = vld [vmem:[%s1260_s5 + $0x44] ss:$8 sps:$4 sm:$0xff]   ;;  %523 = vmatprep.mubr.bf16.mxu0 %v1049_v11  ;;  %v1050_v19 = vld [vmem:[%s1260_s5 + $0x40] ss:$8 sps:$4 sm:$0xff]   ;;  %v1055_v21 = vld [vmem:[%s1260_s5 + $0x54] ss:$8 sps:$4 sm:$0xff]  }
  0x1b   : > { %555 = vmatprep.mubr.bf16.mxu1 %v1052_v12  ;;  %v1057_v22 = vld [vmem:[%s1260_s5 + $0x10] ss:$8 sps:$4 sm:$0xff]   ;;  %v1059_v24 = vld [vmem:[%s1260_s5 + $0x24] ss:$8 sps:$4 sm:$0xff]   ;;  %v1063_v26 = vld [vmem:[%s1260_s5 + $0x20] ss:$8 sps:$4 sm:$0xff]  }
  0x1c   : > { %901 = vmatpush3.bf16.msra.mxu0 %v1038_v7  ;;  %969 = vmatpush3.bf16.msra.mxu1 %v1038_v7  ;;  %v1058_v23 = vld [vmem:[%s1260_s5 + $0x50] ss:$8 sps:$4 sm:$0xff]   ;;  %v1061_v25 = vld [vmem:[%s1260_s5 + $0x64] ss:$8 sps:$4 sm:$0xff]   ;;  %v1064_v27 = vld [vmem:[%s1260_s5 + $0x60] ss:$8 sps:$4 sm:$0xff]  }
  0x1d   : > { %902 = vmatprep.subr.bf16.mxu0 %v1039_v8  ;;  %962 = vmatprep.subr.bf16.mxu1 %v1039_v8  ;;  %v1065_v28 = vld [vmem:[%s1260_s5 + $0x34] ss:$8 sps:$4 sm:$0xff]   ;;  %v1069_v30 = vld [vmem:[%s1260_s5 + $0x30] ss:$8 sps:$4 sm:$0xff]   ;;  %s1368_s15 = scalar_lea.sflag [#allocation3], %s231_s30 }
  0x1e   : > { %v1067_v29 = vld [vmem:[%s1260_s5 + $0x74] ss:$8 sps:$4 sm:$0xff]   ;;  %v1070_v31 = vld [vmem:[%s1260_s5 + $0x70] ss:$8 sps:$4 sm:$0xff]   ;;  %s818_s5 = sshll.u32 %s231_s30, 6 }
  0x1f   : > { %s1311_s7 = scalar_lea.vmem [#allocation2], %s818_s5 }
  0x20   : > { %903 = vmatpush3.bf16.msra.mxu0 %v1040_v9  ;;  %970 = vmatpush3.bf16.msra.mxu1 %v1040_v9  ;;  %s700_s8 = sshll.u32 %s1311_s7, 4  ;;  %s1356_s8 = int_to_ptr.vmem [resolvable:$true] %s700_s8 }
  0x21   : > { %904 = vmatprep.subr.bf16.mxu0 %v1041_v10  ;;  %963 = vmatprep.subr.bf16.mxu1 %v1041_v10  ;;  %s1071_s18 = scalar_lea.vmem %s1356_s8, 1024  ;;  %p1078_p1 = scmp.lt.s32.totalorder %s1356_s8, %s1076_s21 }
  0x22   : > { %p1072_p12 = scmp.ne.s32.totalorder %s1356_s8, %s1071_s18  ;;  %p1079_p2 = scmp.lt.s32.totalorder %s1077_s23, %s1071_s18 }
  0x24   : > { %905 = vmatpush3.bf16.msra.mxu0 %v1042_v13  ;;  %971 = vmatpush3.bf16.msra.mxu1 %v1042_v13  ;;  %p1073_p13 = pnand %p1072_p12, %p1214_p4  ;;  %p1080_p3 = por %p1079_p2, %p1078_p1 }
  0x25   : > { %906 = vmatprep.subr.bf16.mxu0 %v1043_v14  ;;  %964 = vmatprep.subr.bf16.mxu1 %v1043_v14 }
  0x26   : > { %p1074_p0 = pneg %p1073_p13 }
  0x28   : > { %907 = vmatpush3.bf16.msra.mxu0 %v1044_v15  ;;  %972 = vmatpush3.bf16.msra.mxu1 %v1044_v15  ;;  %p1081_p5 = pnand %p1080_p3, %p1074_p0 }
  0x29   : > { %908 = vmatprep.subr.bf16.mxu0 %v1045_v16  ;;  %965 = vmatprep.subr.bf16.mxu1 %v1045_v16 }
  0x2c   : > { %909 = vmatpush3.bf16.msra.mxu0 %v1046_v17  ;;  %973 = vmatpush3.bf16.msra.mxu1 %v1046_v17 }
  0x2f   : > { %524 = vmatmul.mubr.bf16.vlgmr.msra.gmra.mrb[0].mxu0 %v1047_v18  ;;  %556 = vmatmul.mubr.bf16.vlgmr.msra.gmra.mrb[0].mxu1 %v1050_v19 }
  0x30   : > { %531 = vmatprep.mubr.bf16.mxu0 %v1053_v20  ;;  %563 = vmatprep.mubr.bf16.mxu1 %v1055_v21 }
  0x37   : > { %532 = vmatmul.mubr.bf16.gmra.mrb[4].mxu0 %v1057_v22  ;;  %564 = vmatmul.mubr.bf16.gmra.mrb[4].mxu1 %v1058_v23 }
  0x38   : > { %539 = vmatprep.mubr.bf16.mxu0 %v1059_v24  ;;  %571 = vmatprep.mubr.bf16.mxu1 %v1061_v25 }
  0x3f   : > { %540 = vmatmul.mubr.bf16.gmra.mrb[8].mxu0 %v1063_v26  ;;  %572 = vmatmul.mubr.bf16.gmra.mrb[8].mxu1 %v1064_v27 }
  0x40   : > { %547 = vmatprep.mubr.bf16.mxu0 %v1065_v28  ;;  %579 = vmatprep.mubr.bf16.mxu1 %v1067_v29 }
  0x47   : > { %548 = vmatmul.mubr.bf16.gmra.mrb[12].mxu0 %v1069_v30  ;;  %580 = vmatmul.mubr.bf16.gmra.mrb[12].mxu1 %v1070_v31 }
 0x102   : > { %v910_v32 = vpop.f32.mrb[0].mxu0  ;;  %v934_v33 = vpop.f32.mrb[0].mxu1 }
 0x103   : > { %v911_v35 = vpop.f32.mrb[1].mxu0  ;;  %v935_v36 = vpop.f32.mrb[1].mxu1 }
 0x104   : > { %v912_v37 = vadd.f32 %v911_v35, %v910_v32  ;;  %v936_v38 = vadd.f32 %v935_v36, %v934_v33  ;;  %v913_v39 = vpop.f32.mrb[2].mxu0  ;;  %v937_v40 = vpop.f32.mrb[2].mxu1 }
 0x105   : > { %v914_v41 = vpop.f32.mrb[3].mxu0  ;;  %v938_v42 = vpop.f32.mrb[3].mxu1 }
 0x106   : > { %v526_v43 = vadd.f32 %v912_v37, %v1303_v34  ;;  %v558_v44 = vadd.f32 %v936_v38, %v1303_v34  ;;  %v915_v45 = vadd.f32 %v914_v41, %v913_v39  ;;  %v939_v46 = vadd.f32 %v938_v42, %v937_v40 }
 0x108   : > { %v588_v47 = vmax.f32 %v526_v43, 0.0  ;;  %v596_v48 = vmax.f32 %v558_v44, 0.0  ;;  %v529_v49 = vadd.f32 %v915_v45, %v1303_v34  ;;  %v561_v50 = vadd.f32 %v939_v46, %v1303_v34 }
 0x10a   : > { %v877_v51 = vpack.c.bf16 %v588_v47, %v588_v47  ;;  %v885_v52 = vpack.c.bf16 %v596_v48, %v596_v48  ;;  %v589_v53 = vmax.f32 %v529_v49, 0.0  ;;  %v597_v54 = vmax.f32 %v561_v50, 0.0  ;;  %v916_v55 = vpop.f32.mrb[4].mxu0  ;;  %v940_v56 = vpop.f32.mrb[4].mxu1 }
 0x10b   : > { %v917_v57 = vpop.f32.mrb[5].mxu0  ;;  %v941_v58 = vpop.f32.mrb[5].mxu1 }
 0x10c   : > { %669 = vst.msk [vmem:[%s1311_s7] sm:$0xf] %vm668_vm0, %v877_v51  ;;  %677 = vst.msk [vmem:[%s1311_s7 + $0x20] sm:$0xf] %vm668_vm0, %v885_v52  ;;  %v878_v59 = vpack.c.bf16 %v589_v53, %v589_v53  ;;  %v886_v60 = vpack.c.bf16 %v597_v54, %v597_v54  ;;  %v918_v61 = vadd.f32 %v917_v57, %v916_v55  ;;  %v919_v63 = vpop.f32.mrb[6].mxu0  ;;  %v943_v0 = vpop.f32.mrb[6].mxu1 }
 0x10d   : > { %v942_v62 = vadd.f32 %v941_v58, %v940_v56  ;;  %v920_v1 = vpop.f32.mrb[7].mxu0  ;;  %v944_v2 = vpop.f32.mrb[7].mxu1 }
 0x10e   : > { %670 = vst.msk [vmem:[%s1311_s7 + $0x4] sm:$0xf] %vm668_vm0, %v878_v59  ;;  %678 = vst.msk [vmem:[%s1311_s7 + $0x24] sm:$0xf] %vm668_vm0, %v886_v60  ;;  %v534_v3 = vadd.f32 %v918_v61, %v1303_v34  ;;  %v921_v5 = vadd.f32 %v920_v1, %v919_v63  ;;  %v945_v6 = vadd.f32 %v944_v2, %v943_v0 }
 0x10f   : > { %v566_v4 = vadd.f32 %v942_v62, %v1303_v34 }
 0x110   : > { %v590_v7 = vmax.f32 %v534_v3, 0.0  ;;  %v537_v9 = vadd.f32 %v921_v5, %v1303_v34  ;;  %v569_v10 = vadd.f32 %v945_v6, %v1303_v34 }
 0x111   : > { %v598_v8 = vmax.f32 %v566_v4, 0.0 }
 0x112   : > { %v879_v11 = vpack.c.bf16 %v590_v7, %v590_v7  ;;  %v591_v13 = vmax.f32 %v537_v9, 0.0  ;;  %v599_v14 = vmax.f32 %v569_v10, 0.0  ;;  %v922_v15 = vpop.f32.mrb[8].mxu0  ;;  %v946_v16 = vpop.f32.mrb[8].mxu1 }
 0x113   : > { %v887_v12 = vpack.c.bf16 %v598_v8, %v598_v8  ;;  %v923_v17 = vpop.f32.mrb[9].mxu0  ;;  %v947_v18 = vpop.f32.mrb[9].mxu1 }
 0x114   : > { %671 = vst.msk [vmem:[%s1311_s7 + $0x8] sm:$0xf] %vm668_vm0, %v879_v11  ;;  %v880_v19 = vpack.c.bf16 %v591_v13, %v591_v13  ;;  %v888_v20 = vpack.c.bf16 %v599_v14, %v599_v14  ;;  %v924_v21 = vadd.f32 %v923_v17, %v922_v15  ;;  %v948_v22 = vadd.f32 %v947_v18, %v946_v16  ;;  %v925_v23 = vpop.f32.mrb[10].mxu0  ;;  %v949_v24 = vpop.f32.mrb[10].mxu1 }
 0x115   : > { %679 = vst.msk [vmem:[%s1311_s7 + $0x28] sm:$0xf] %vm668_vm0, %v887_v12  ;;  %v926_v25 = vpop.f32.mrb[11].mxu0  ;;  %v950_v26 = vpop.f32.mrb[11].mxu1 }
 0x116   : > { %672 = vst.msk [vmem:[%s1311_s7 + $0xc] sm:$0xf] %vm668_vm0, %v880_v19  ;;  %680 = vst.msk [vmem:[%s1311_s7 + $0x2c] sm:$0xf] %vm668_vm0, %v888_v20  ;;  %v542_v27 = vadd.f32 %v924_v21, %v1303_v34  ;;  %v574_v28 = vadd.f32 %v948_v22, %v1303_v34  ;;  %v927_v29 = vadd.f32 %v926_v25, %v925_v23 }
 0x117   : > { %v951_v30 = vadd.f32 %v950_v26, %v949_v24 }
 0x118   : > { %v592_v31 = vmax.f32 %v542_v27, 0.0  ;;  %v600_v32 = vmax.f32 %v574_v28, 0.0  ;;  %v545_v33 = vadd.f32 %v927_v29, %v1303_v34 }
 0x119   : > { %v577_v35 = vadd.f32 %v951_v30, %v1303_v34 }
 0x11a   : > { %v881_v36 = vpack.c.bf16 %v592_v31, %v592_v31  ;;  %v889_v37 = vpack.c.bf16 %v600_v32, %v600_v32  ;;  %v593_v38 = vmax.f32 %v545_v33, 0.0  ;;  %v928_v40 = vpop.f32.mrb[12].mxu0  ;;  %v952_v41 = vpop.f32.mrb[12].mxu1 }
 0x11b   : > { %v601_v39 = vmax.f32 %v577_v35, 0.0  ;;  %v929_v42 = vpop.f32.mrb[13].mxu0  ;;  %v953_v43 = vpop.f32.mrb[13].mxu1 }
 0x11c   : > { %673 = vst.msk [vmem:[%s1311_s7 + $0x10] sm:$0xf] %vm668_vm0, %v881_v36  ;;  %681 = vst.msk [vmem:[%s1311_s7 + $0x30] sm:$0xf] %vm668_vm0, %v889_v37  ;;  %v882_v44 = vpack.c.bf16 %v593_v38, %v593_v38  ;;  %v930_v46 = vadd.f32 %v929_v42, %v928_v40  ;;  %v954_v47 = vadd.f32 %v953_v43, %v952_v41  ;;  %v931_v48 = vpop.f32.mrb[14].mxu0  ;;  %v955_v49 = vpop.f32.mrb[14].mxu1 }
 0x11d   : > { %v890_v45 = vpack.c.bf16 %v601_v39, %v601_v39  ;;  %v932_v50 = vpop.f32.mrb[15].mxu0  ;;  %v956_v51 = vpop.f32.mrb[15].mxu1 }
 0x11e   : > { %674 = vst.msk [vmem:[%s1311_s7 + $0x14] sm:$0xf] %vm668_vm0, %v882_v44  ;;  %v550_v52 = vadd.f32 %v930_v46, %v1303_v34  ;;  %v582_v53 = vadd.f32 %v954_v47, %v1303_v34  ;;  %v933_v54 = vadd.f32 %v932_v50, %v931_v48  ;;  %v957_v55 = vadd.f32 %v956_v51, %v955_v49 }
 0x11f   : > { %682 = vst.msk [vmem:[%s1311_s7 + $0x34] sm:$0xf] %vm668_vm0, %v890_v45 }
 0x120   : > { %v594_v56 = vmax.f32 %v550_v52, 0.0  ;;  %v602_v57 = vmax.f32 %v582_v53, 0.0  ;;  %v553_v58 = vadd.f32 %v933_v54, %v1303_v34  ;;  %v585_v59 = vadd.f32 %v957_v55, %v1303_v34 }
 0x122   : > { %v883_v60 = vpack.c.bf16 %v594_v56, %v594_v56  ;;  %v891_v61 = vpack.c.bf16 %v602_v57, %v602_v57  ;;  %v595_v62 = vmax.f32 %v553_v58, 0.0  ;;  %v603_v63 = vmax.f32 %v585_v59, 0.0 }
 0x124   : > { %675 = vst.msk [vmem:[%s1311_s7 + $0x18] sm:$0xf] %vm668_vm0, %v883_v60  ;;  %683 = vst.msk [vmem:[%s1311_s7 + $0x38] sm:$0xf] %vm668_vm0, %v891_v61  ;;  %v884_v34 = vpack.c.bf16 %v595_v62, %v595_v62  ;;  %v892_v0 = vpack.c.bf16 %v603_v63, %v603_v63 }
 0x126   : > { %676 = vst.msk [vmem:[%s1311_s7 + $0x1c] sm:$0xf] %vm668_vm0, %v884_v34  ;;  %684 = vst.msk [vmem:[%s1311_s7 + $0x3c] sm:$0xf] %vm668_vm0, %v892_v0 }
 0x127   : > { %1084 = shalt.err (!%p1081_p5)
}
 0x128   : > { %s1085_s26 = scalar_lea.hbm %s1354_s11, 1024  ;;  %s1089_s30 = scalar_lea.hbm %s1417_s3, 16384 }
 0x129   : > { %p1086_p6 = scmp.ne.s32.totalorder %s1354_s11, %s1085_s26  ;;  %p1090_p10 = scmp.lt.u32.totalorder %s1354_s11, %s1417_s3 }
 0x12a   : > { %p1091_p11 = scmp.lt.u32.totalorder %s1089_s30, %s1085_s26  ;;  %p1093_p13 = scmp.lt.u32.totalorder %s1085_s26, %s1354_s11 }
 0x12b   : > { %p1087_p7 = pnand %p1086_p6, %p1214_p4 }
 0x12c   : > { %p1092_p12 = por %p1091_p11, %p1090_p10 }
 0x12d   : > { %p1088_p9 = pneg %p1087_p7 }
 0x12e   : > { %p1094_p0 = por %p1093_p13, %p1092_p12 }
 0x130   : > { %p1095_p1 = pnand %p1094_p0, %p1088_p9 }
 0x132   : > { %1098 = shalt.err (!%p1095_p1)
}
 0x133   : > { %s1152_s5 = smov 64   ;;  %s1153_s7 = smov 4  }
 0x134   : > { %974 = dma.vmem_to_hbm [thread:$0]  (%p1214_p4), %s1356_s8, 1024, %s1354_s11, %s1368_s15, %s1152_s5, %s1152_s5, %s1153_s7  }
 0x135 PF: > { %p980_p2 = scmp.ge.s32.totalorder %s1149_s17, 2  ;;  %s715_s28 = sand.u32 1, %s1129_s12  }
 0x136   : > { %s716_s9 = scalar_lea.sflag [#allocation3], %s715_s28 }
 0x137   : > { %p977_p3 = pnand %p980_p2, %p1221_p8 }
 0x139   : > { %1124 = dma.done.wait (!%p977_p3), %s716_s9, 1024  }
 0x13a   : > { %1126 = vsyncadd (!%p977_p3), %s716_s9, 4294966272  ;;  %s16_s17 = sadd.s32 1, %s1149_s17   ;;  %s1420_s12 = smov %s1133_s13 }
 0x13b   : > { %p13_p5 = scmp.ge.s32.totalorder %s16_s17, 18   ;;  %s1421_s13 = smov %s1137_s14 }
 0x13c   : > { %s1422_s14 = smov %s1227_s25  ;;  %s1423_s15 = smov %s1145_s16 }
 0x13d   : > { %s1424_s16 = smov %s1426_s20  ;;  %15 = sbr.rel (!%p13_p5) target bundleno = 4 (0x4), region = 73 }
 0x144   :  { %721 = vsyncpa [#allocation3], 1 }
 0x145   :  { %723 = vsyncpa [#allocation3 + $0x1], 1 }

</bundles_post_ra>
